<compile_context>
chip_gen: v7x
topology: tpu7x:2x2x1
jax: 0.10.0
libtpu: 0.0.40
codegen_flags: <defaults>
</compile_context>

<pallas_src>
import jax
import jax.numpy as jnp
from jax.experimental import pallas as pl
from jax.experimental.pallas import tpu as pltpu

LANE = 128


def _round_up(x, m):
    return (x + m - 1) // m * m


def generator_kernel(z_ref, lab_ref, w1z_ref, ct_ref, b1_ref, w2_ref, b2_ref, out_ref):
    """One batch tile:  out = sigmoid(relu(z @ W1_z + class_table[label] + b1) @ W2 + b2)."""
    tb = z_ref.shape[0]
    nc_pad = ct_ref.shape[0]

    z = z_ref[...]                                   # (TB, Z)      f32
    labels = lab_ref[...]                            # (TB, 1)      i32

    # Exact one-hot built in-register (lane iota vs. broadcast labels).
    iota = jax.lax.broadcasted_iota(jnp.int32, (tb, nc_pad), 1)
    onehot = (labels == iota).astype(jnp.bfloat16)   # (TB, NC_PAD)

    # fc1: noise part + folded embedding contribution + bias, ReLU (f32 accum).
    h = jnp.dot(z.astype(jnp.bfloat16), w1z_ref[...].astype(jnp.bfloat16),
                preferred_element_type=jnp.float32)
    h = h + jnp.dot(onehot, ct_ref[...].astype(jnp.bfloat16),
                    preferred_element_type=jnp.float32)
    h = jnp.maximum(h + b1_ref[...], 0.0)

    # fc2 + sigmoid.
    o = jnp.dot(h.astype(jnp.bfloat16), w2_ref[...].astype(jnp.bfloat16),
                preferred_element_type=jnp.float32) + b2_ref[...]
    out_ref[...] = jax.nn.sigmoid(o).astype(out_ref.dtype)


def generator_forward(z, labels, params, *, block_b=128, out_dtype=jnp.float32):
    """z: (B, z_dim) f32, labels: (B,) int.  Returns (B, x_dim)."""
    emb = params["embedding"]               # (nc, nc)
    w1, b1 = params["w1"], params["b1"]     # (z_dim + nc, h_dim), (h_dim,)
    w2, b2 = params["w2"], params["b2"]     # (h_dim, x_dim),      (x_dim,)

    z = z.astype(jnp.float32)
    B, z_dim = z.shape
    nc = emb.shape[0]
    h_dim = w1.shape[1]
    x_dim = w2.shape[1]

    # Lane-dense padded feature dims (zero-padded weights; sliced off output).
    h_pad = _round_up(h_dim, LANE)
    x_pad = _round_up(x_dim, LANE)
    nc_pad = _round_up(nc, LANE)

    # Fold embedding lookup + concat into fc1.
    w1z = w1[:z_dim, :]
    class_table = jnp.dot(emb, w1[z_dim:, :])                 # (nc, h_dim)

    w1z_p = jnp.zeros((z_dim, h_pad), jnp.float32).at[:, :h_dim].set(w1z)
    ct_p = jnp.zeros((nc_pad, h_pad), jnp.float32).at[:nc, :h_dim].set(class_table)
    b1_p = jnp.zeros((1, h_pad), jnp.float32).at[0, :h_dim].set(b1.reshape(-1))
    w2_p = jnp.zeros((h_pad, x_pad), jnp.float32).at[:h_dim, :x_dim].set(w2)
    b2_p = jnp.zeros((1, x_pad), jnp.float32).at[0, :x_dim].set(b2.reshape(-1))

    # Batch tiling: grid over B, weights resident in VMEM across steps.
    tb = min(block_b, _round_up(B, 8))
    b_pad = _round_up(B, tb)
    lab = labels.astype(jnp.int32).reshape(-1, 1)
    if b_pad != B:
        z = jnp.pad(z, ((0, b_pad - B), (0, 0)))
        lab = jnp.pad(lab, ((0, b_pad - B), (0, 0)))

    grid = (b_pad // tb,)
    flops = 2 * b_pad * (z_dim * h_pad + nc_pad * h_pad + h_pad * x_pad)
    bytes_accessed = 4 * (z.size + lab.size + w1z_p.size + ct_p.size
                          + b1_p.size + w2_p.size + b2_p.size + b_pad * x_pad)

    def resident(shape):
        return pl.BlockSpec(shape, lambda i: (0, 0))

    out_padded = pl.pallas_call(
        generator_kernel,
        out_shape=jax.ShapeDtypeStruct((b_pad, x_pad), out_dtype),
        grid_spec=pltpu.PrefetchScalarGridSpec(
            num_scalar_prefetch=0,
            grid=grid,
            in_specs=[
                pl.BlockSpec((tb, z_dim), lambda i: (i, 0)),   # z tile
                pl.BlockSpec((tb, 1), lambda i: (i, 0)),       # label tile
                resident((z_dim, h_pad)),                      # W1_z
                resident((nc_pad, h_pad)),                     # class table
                resident((1, h_pad)),                          # b1
                resident((h_pad, x_pad)),                      # W2
                resident((1, x_pad)),                          # b2
            ],
            out_specs=pl.BlockSpec((tb, x_pad), lambda i: (i, 0)),
        ),
        compiler_params=pltpu.CompilerParams(
            dimension_semantics=("parallel",),
        ),
        cost_estimate=pl.CostEstimate(
            flops=flops,
            transcendentals=b_pad * x_pad,
            bytes_accessed=bytes_accessed,
        ),
    )(z, lab, w1z_p, ct_p, b1_p, w2_p, b2_p)

    return out_padded[:B, :x_dim].astype(out_dtype)


def xavier_normal(key, fan_in, fan_out):
    std = (2.0 / (fan_in + fan_out)) ** 0.5
    # PyTorch nn.Linear weight is (out, in); we store the transpose (in, out).
    return std * jax.random.normal(key, (fan_in, fan_out), dtype=jnp.float32)


def init_params(key, z_dim, h_dim, x_dim, num_classes):
    k_emb, k_w1, k_w2 = jax.random.split(key, 3)
    return {
        # nn.Embedding default init: N(0, 1)
        "embedding": jax.random.normal(k_emb, (num_classes, num_classes), dtype=jnp.float32),
        "w1": xavier_normal(k_w1, z_dim + num_classes, h_dim),
        "b1": jnp.zeros((h_dim,), dtype=jnp.float32),
        "w2": xavier_normal(k_w2, h_dim, x_dim),
        "b2": jnp.zeros((x_dim,), dtype=jnp.float32),
    }


if __name__ == "__main__":
    # Small shapes consistent with the module (h_dim=128, num_classes=10).
    B, z_dim, h_dim, x_dim, num_classes = 200, 16, 128, 64, 10

    key = jax.random.PRNGKey(0)
    k_params, k_z, k_lab = jax.random.split(key, 3)

    params = init_params(k_params, z_dim, h_dim, x_dim, num_classes)
    z = jax.random.normal(k_z, (B, z_dim), dtype=jnp.float32)
    labels = jax.random.randint(k_lab, (B,), 0, num_classes, dtype=jnp.int32)

    out = generator_forward(z, labels, params, block_b=64)
    out = jax.block_until_ready(out)

    # Reference check in plain f32 JAX (same math as the PyTorch module).
    c = jnp.take(params["embedding"], labels, axis=0)
    x = jnp.concatenate([z, c], axis=1)
    h_ref = jnp.maximum(x @ params["w1"] + params["b1"], 0.0)
    out_ref = jax.nn.sigmoid(h_ref @ params["w2"] + params["b2"])

    assert out.shape == (B, x_dim)
    max_err = float(jnp.max(jnp.abs(out - out_ref)))
    # bf16 MXU operands with f32 accumulation -> ~1e-3 level error vs f32 ref.
    assert max_err < 1e-2, f"max abs err {max_err}"

    print("KERNEL_OK")
</pallas_src>

<mosaic_0001>
module attributes {stable_mosaic.version = 11 : i64} {
  func.func @generator_kernel(%arg0: i32, %arg1: memref<64x16xf32, #tpu.memory_space<vmem>>, %arg2: memref<64x1xi32, #tpu.memory_space<vmem>>, %arg3: memref<16x128xf32, #tpu.memory_space<vmem>>, %arg4: memref<128x128xf32, #tpu.memory_space<vmem>>, %arg5: memref<1x128xf32, #tpu.memory_space<vmem>>, %arg6: memref<128x128xf32, #tpu.memory_space<vmem>>, %arg7: memref<1x128xf32, #tpu.memory_space<vmem>>, %arg8: memref<64x128xf32, #tpu.memory_space<vmem>>) attributes {dimension_semantics = [#tpu.dimension_semantics<parallel>], iteration_bounds = array<i64: 4>, scalar_prefetch = 0 : i64, scratch_operands = 0 : i64, tpu.core_type = #tpu.core_type<tc>, window_params = [{transform_indices = @transform_0, window_bounds = array<i64: 64, 16>}, {transform_indices = @transform_1, window_bounds = array<i64: 64, 1>}, {pipeline_mode = #tpu.pipeline_mode<synchronous>, transform_indices = @transform_2, window_bounds = array<i64: 16, 128>}, {pipeline_mode = #tpu.pipeline_mode<synchronous>, transform_indices = @transform_3, window_bounds = array<i64: 128, 128>}, {pipeline_mode = #tpu.pipeline_mode<synchronous>, transform_indices = @transform_4, window_bounds = array<i64: 1, 128>}, {pipeline_mode = #tpu.pipeline_mode<synchronous>, transform_indices = @transform_5, window_bounds = array<i64: 128, 128>}, {pipeline_mode = #tpu.pipeline_mode<synchronous>, transform_indices = @transform_6, window_bounds = array<i64: 1, 128>}, {transform_indices = @transform_7, window_bounds = array<i64: 64, 128>}]} {
    %c0 = arith.constant 0 : index
    %c0_0 = arith.constant 0 : index
    %0 = vector.load %arg1[%c0, %c0_0] : memref<64x16xf32, #tpu.memory_space<vmem>>, vector<64x16xf32>
    %c0_1 = arith.constant 0 : index
    %c0_2 = arith.constant 0 : index
    %1 = vector.load %arg2[%c0_1, %c0_2] : memref<64x1xi32, #tpu.memory_space<vmem>>, vector<64x1xi32>
    %2 = tpu.iota {dimensions = array<i32: 1>} : vector<64x128xi32>
    %3 = vector.broadcast %1 : vector<64x1xi32> to vector<64x128xi32>
    %4 = arith.cmpi eq, %3, %2 : vector<64x128xi32>
    %5 = arith.extui %4 : vector<64x128xi1> to vector<64x128xi32>
    %6 = arith.sitofp %5 : vector<64x128xi32> to vector<64x128xf32>
    %7 = arith.truncf %6 : vector<64x128xf32> to vector<64x128xbf16>
    %8 = arith.truncf %0 : vector<64x16xf32> to vector<64x16xbf16>
    %c0_3 = arith.constant 0 : index
    %c0_4 = arith.constant 0 : index
    %9 = vector.load %arg3[%c0_3, %c0_4] : memref<16x128xf32, #tpu.memory_space<vmem>>, vector<16x128xf32>
    %10 = arith.truncf %9 : vector<16x128xf32> to vector<16x128xbf16>
    %cst = arith.constant dense<0.000000e+00> : vector<64x128xf32>
    %11 = tpu.matmul %8, %10, %cst {dimension_numbers = #tpu.dot_dimension_numbers<[1], [0], [0], [1], [0, 0, 1, 1], [], []>} : vector<64x16xbf16>, vector<16x128xbf16>, vector<64x128xf32> -> vector<64x128xf32>
    %c0_5 = arith.constant 0 : index
    %c0_6 = arith.constant 0 : index
    %12 = vector.load %arg4[%c0_5, %c0_6] : memref<128x128xf32, #tpu.memory_space<vmem>>, vector<128x128xf32>
    %13 = arith.truncf %12 : vector<128x128xf32> to vector<128x128xbf16>
    %cst_7 = arith.constant dense<0.000000e+00> : vector<64x128xf32>
    %14 = tpu.matmul %7, %13, %cst_7 {dimension_numbers = #tpu.dot_dimension_numbers<[1], [0], [0], [1], [0, 0, 1, 1], [], []>} : vector<64x128xbf16>, vector<128x128xbf16>, vector<64x128xf32> -> vector<64x128xf32>
    %15 = arith.addf %11, %14 : vector<64x128xf32>
    %c0_8 = arith.constant 0 : index
    %c0_9 = arith.constant 0 : index
    %16 = vector.load %arg5[%c0_8, %c0_9] : memref<1x128xf32, #tpu.memory_space<vmem>>, vector<1x128xf32>
    %17 = vector.broadcast %16 : vector<1x128xf32> to vector<64x128xf32>
    %18 = arith.addf %15, %17 : vector<64x128xf32>
    %cst_10 = arith.constant 0.000000e+00 : f32
    %19 = vector.broadcast %cst_10 : f32 to vector<64x128xf32>
    %20 = arith.maximumf %18, %19 : vector<64x128xf32>
    %21 = arith.truncf %20 : vector<64x128xf32> to vector<64x128xbf16>
    %c0_11 = arith.constant 0 : index
    %c0_12 = arith.constant 0 : index
    %22 = vector.load %arg6[%c0_11, %c0_12] : memref<128x128xf32, #tpu.memory_space<vmem>>, vector<128x128xf32>
    %23 = arith.truncf %22 : vector<128x128xf32> to vector<128x128xbf16>
    %cst_13 = arith.constant dense<0.000000e+00> : vector<64x128xf32>
    %24 = tpu.matmul %21, %23, %cst_13 {dimension_numbers = #tpu.dot_dimension_numbers<[1], [0], [0], [1], [0, 0, 1, 1], [], []>} : vector<64x128xbf16>, vector<128x128xbf16>, vector<64x128xf32> -> vector<64x128xf32>
    %c0_14 = arith.constant 0 : index
    %c0_15 = arith.constant 0 : index
    %25 = vector.load %arg7[%c0_14, %c0_15] : memref<1x128xf32, #tpu.memory_space<vmem>>, vector<1x128xf32>
    %26 = vector.broadcast %25 : vector<1x128xf32> to vector<64x128xf32>
    %27 = arith.addf %24, %26 : vector<64x128xf32>
    %28 = arith.negf %27 : vector<64x128xf32>
    %29 = math.exp %28 : vector<64x128xf32>
    %cst_16 = arith.constant 1.000000e+00 : f32
    %30 = vector.broadcast %cst_16 : f32 to vector<64x128xf32>
    %31 = arith.addf %30, %29 : vector<64x128xf32>
    %32 = arith.divf %30, %31 : vector<64x128xf32>
    %c0_17 = arith.constant 0 : index
    %c0_18 = arith.constant 0 : index
    %33 = vector.load %arg8[%c0_17, %c0_18] : memref<64x128xf32, #tpu.memory_space<vmem>>, vector<64x128xf32>
    tpu.vector_store %arg8[%c0_17, %c0_18], %32 {strides = array<i32>} : memref<64x128xf32, #tpu.memory_space<vmem>>, vector<64x128xf32>,
    return
  }
  func.func @transform_0(%arg0: i32) -> (i32, i32) {
    %c0_i32 = arith.constant 0 : i32
    %c0_i32_0 = arith.constant 0 : i32
    return %arg0, %c0_i32 : i32, i32
  }
  func.func @transform_1(%arg0: i32) -> (i32, i32) {
    %c0_i32 = arith.constant 0 : i32
    %c0_i32_0 = arith.constant 0 : i32
    return %arg0, %c0_i32 : i32, i32
  }
  func.func @transform_2(%arg0: i32) -> (i32, i32) {
    %c0_i32 = arith.constant 0 : i32
    %c0_i32_0 = arith.constant 0 : i32
    %c0_i32_1 = arith.constant 0 : i32
    return %c0_i32, %c0_i32_0 : i32, i32
  }
  func.func @transform_3(%arg0: i32) -> (i32, i32) {
    %c0_i32 = arith.constant 0 : i32
    %c0_i32_0 = arith.constant 0 : i32
    %c0_i32_1 = arith.constant 0 : i32
    return %c0_i32, %c0_i32_0 : i32, i32
  }
  func.func @transform_4(%arg0: i32) -> (i32, i32) {
    %c0_i32 = arith.constant 0 : i32
    %c0_i32_0 = arith.constant 0 : i32
    %c0_i32_1 = arith.constant 0 : i32
    return %c0_i32, %c0_i32_0 : i32, i32
  }
  func.func @transform_5(%arg0: i32) -> (i32, i32) {
    %c0_i32 = arith.constant 0 : i32
    %c0_i32_0 = arith.constant 0 : i32
    %c0_i32_1 = arith.constant 0 : i32
    return %c0_i32, %c0_i32_0 : i32, i32
  }
  func.func @transform_6(%arg0: i32) -> (i32, i32) {
    %c0_i32 = arith.constant 0 : i32
    %c0_i32_0 = arith.constant 0 : i32
    %c0_i32_1 = arith.constant 0 : i32
    return %c0_i32, %c0_i32_0 : i32, i32
  }
  func.func @transform_7(%arg0: i32) -> (i32, i32) {
    %c0_i32 = arith.constant 0 : i32
    %c0_i32_0 = arith.constant 0 : i32
    return %arg0, %c0_i32 : i32, i32
  }
}

</mosaic_0001>

<bundles_post_ra>
// kernel: tpu_custom_call.1
= control target key start
LH: loop header
LB: loop body
LE: loop exit
PB: predicated region body
PF: predicated region fallthrough
CT: control target
= control target key end

     0   :  { %12 = vsyncpa [#allocation3], 0  ;;  %s1381_s0 = inlined_call_operand.vmem [shape: f32[256,16], index: 0, kind: input, shape index: {}]   ;;  %s1382_s1 = inlined_call_operand.vmem [shape: s32[256,1], index: 1, kind: input, shape index: {}]   ;;  %s1383_s2 = inlined_call_operand.vmem [shape: f32[16,128], index: 2, kind: input, shape index: {}]   ;;  %s1384_s3 = inlined_call_operand.vmem [shape: f32[128,128], index: 3, kind: input, shape index: {}]   ;;  %s1385_s4 = inlined_call_operand.vmem [shape: f32[1,128], index: 4, kind: input, shape index: {}]   ;;  %s1386_s5 = inlined_call_operand.vmem [shape: f32[128,128], index: 5, kind: input, shape index: {}]   ;;  %s1387_s6 = inlined_call_operand.vmem [shape: f32[1,128], index: 6, kind: input, shape index: {}]   ;;  %s1388_s7 = inlined_call_operand.hbm [shape: f32[256,128], index: 7, kind: output, shape index: {}]  }
   0x1   :  { %14 = vsyncpa [#allocation3 + $0x1], 0  ;;  %s1140_s24 = smov 0   ;;  %s1142_s25 = smov 0  }
   0x2   :  { %s1144_s26 = smov 0   ;;  %s1146_s27 = smov 0  }
   0x3 LB: > { %s1161_s28 = sadd.s32 4294967295, %s1093_s27   ;;  %s814_s29 = sadd.s32 4294967294, %s1093_s27   ;;  %s1093_s27 = sphi %s1146_s27, %s1394_s27   ;;  %s1089_s26 = sphi %s1144_s26, %s1393_s26   ;;  %s1085_s25 = sphi %s1142_s25, %s1392_s25   ;;  %s1081_s24 = sphi %s1140_s24, %s1391_s24  }
   0x4   : > { %s1165_s30 = sadd.s32 1, %s1093_s27   ;;  %s184_s8 = sadd.s32 1, %s1089_s26 }
   0x5   : > { %s181_s9 = ssub.s32 %s1093_s27, %s1165_s30  ;;  %p194_p0 = scmp.ne.s32.totalorder %s1089_s26, %s1085_s25 }
   0x6   : > { %p182_p1 = scmp.eq.s32.totalorder %s181_s9, 0  ;;  %p195_p2 = scmp.eq.s32.totalorder %s1161_s28, 3 }
   0x7   : > { %p200_p3 = scmp.ne.s32.totalorder %s1085_s25, %s1081_s24  ;;  %p201_p4 = scmp.eq.s32.totalorder %s814_s29, 3 }
   0x8   : > { %s1176_s10 = scalar_select %p182_p1, %s1089_s26, %s184_s8  }
   0x9   : > { %p1178_p5 = por %p195_p2, %p194_p0  ;;  %p1182_p6 = por %p201_p4, %p200_p3 }
   0xa   : > { %p817_p7 = scmp.ge.s32.totalorder %s1093_s27, 1  ;;  %p252_p8 = scmp.lt.s32.totalorder %s1093_s27, 5 }
   0xc   : > { %p253_p9 = pnand %p817_p7, %p252_p8 }
   0xd   : > { %s819_s13 = sshll.u32 (!%p253_p9), %s1161_s28, 3  ;;  %v380_v0 = vld [vmem:[%s1384_s3] sm:$0xff] (!%p253_p9)  ;;  %v381_v1 = vld [vmem:[%s1384_s3 + $0x8] sm:$0xff] (!%p253_p9)  ;;  %v382_v2 = vld [vmem:[%s1384_s3 + $0x10] sm:$0xff] (!%p253_p9)  ;;  %v1095_v3 = vmov (!%p253_p9), 0   ;;  %vm469_vm0 = vcmask (!%p253_p9), 130048   ;;  %v319_v63 = vlaneseq (!%p253_p9) }
   0xe   : > { %256 = sbr.rel (%p253_p9) target bundleno = 651 (0x28b), region = 48  ;;  %998 = vset.pattern.permute.xlu1 (!%p253_p9), %v1095_v3  ;;  %997 = vset.pattern.permute.xlu0 (!%p253_p9), %v1095_v3  ;;  %p290_p10 = scmp.lt.s32.totalorder (!%p253_p9), %s819_s13, 31  ;;  %v396_v4 = vpack.c.bf16 (!%p253_p9), %v381_v1, %v380_v0  ;;  %v383_v5 = vld [vmem:[%s1384_s3 + $0x18] sm:$0xff] (!%p253_p9)  ;;  %v384_v7 = vld [vmem:[%s1384_s3 + $0x20] sm:$0xff] (!%p253_p9)  ;;  %v385_v8 = vld [vmem:[%s1384_s3 + $0x28] sm:$0xff] (!%p253_p9) }
   0xf   : > { %v397_v6 = vpack.c.bf16 (!%p253_p9), %v383_v5, %v382_v2  ;;  %v377_v9 = vld [vmem:[%s1383_s2] sm:$0xff] (!%p253_p9)  ;;  %v378_v10 = vld [vmem:[%s1383_s2 + $0x8] sm:$0xff] (!%p253_p9)  ;;  %v398_v11 = vpack.c.bf16 (!%p253_p9), %v385_v8, %v384_v7  ;;  %v386_v12 = vld [vmem:[%s1384_s3 + $0x30] sm:$0xff] (!%p253_p9)  ;;  %v320_v2 = vand.u32 (!%p253_p9), 127, %v319_v63  ;;  %v1096_v5 = vmov (!%p253_p9), 1.0|1.0  }
  0x10   : > { %888 = vmatprep.subr.bf16.mxu0 (!%p253_p9), %v396_v4  ;;  %v379_v13 = vpack.c.bf16 (!%p253_p9), %v378_v10, %v377_v9  ;;  %v387_v16 = vld [vmem:[%s1384_s3 + $0x38] sm:$0xff] (!%p253_p9)  ;;  %v388_v20 = vld [vmem:[%s1384_s3 + $0x40] sm:$0xff] (!%p253_p9)  ;;  %v389_v23 = vld [vmem:[%s1384_s3 + $0x48] sm:$0xff] (!%p253_p9)  ;;  %s286_s29 = sand.u32 (!%p253_p9), 1, %s1085_s25   ;;  %s1097_s19 = smov (!%p253_p9), [#allocation2]  }
  0x11   : > { %889 = vmatpush3.bf16.msra.mxu0 (!%p253_p9), %v396_v4  ;;  %v399_v19 = vpack.c.bf16 (!%p253_p9), %v387_v16, %v386_v12  ;;  %v400_v30 = vpack.c.bf16 (!%p253_p9), %v389_v23, %v388_v20  ;;  %v390_v31 = vld [vmem:[%s1384_s3 + $0x50] sm:$0xff] (!%p253_p9)  ;;  %v391_v32 = vld [vmem:[%s1384_s3 + $0x58] sm:$0xff] (!%p253_p9)  ;;  %v392_v41 = vld [vmem:[%s1384_s3 + $0x60] sm:$0xff] (!%p253_p9)  ;;  %s818_s8 = sshll.u32 (!%p253_p9), %s286_s29, 6 }
  0x12   : > { %890 = vmatprep.subr.bf16.mxu0 (!%p253_p9), %v397_v6  ;;  %912 = vmatprep.subr.bf16.mxu1 (!%p253_p9), %v379_v13  ;;  %v401_v37 = vpack.c.bf16 (!%p253_p9), %v391_v32, %v390_v31  ;;  %v393_v42 = vld [vmem:[%s1384_s3 + $0x68] sm:$0xff] (!%p253_p9)  ;;  %v394_v45 = vld [vmem:[%s1384_s3 + $0x70] sm:$0xff] (!%p253_p9)  ;;  %v395_v46 = vld [vmem:[%s1384_s3 + $0x78] sm:$0xff] (!%p253_p9) }
  0x13   : > { %913 = vmatpush3.bf16.msra.mxu1 (!%p253_p9), %v379_v13  ;;  %v402_v44 = vpack.c.bf16 (!%p253_p9), %v393_v42, %v392_v41  ;;  %v574_v47 = vld [vmem:[%s1386_s5] sm:$0xff] (!%p253_p9)  ;;  %v575_v48 = vld [vmem:[%s1386_s5 + $0x8] sm:$0xff] (!%p253_p9)  ;;  %v576_v49 = vld [vmem:[%s1386_s5 + $0x10] sm:$0xff] (!%p253_p9)  ;;  %v403_v52 = vpack.c.bf16 (!%p253_p9), %v395_v46, %v394_v45 }
  0x14   : > { %v590_v50 = vpack.c.bf16 (!%p253_p9), %v575_v48, %v574_v47  ;;  %v577_v51 = vld [vmem:[%s1386_s5 + $0x18] sm:$0xff] (!%p253_p9)  ;;  %v578_v54 = vld [vmem:[%s1386_s5 + $0x20] sm:$0xff] (!%p253_p9)  ;;  %v579_v55 = vld [vmem:[%s1386_s5 + $0x28] sm:$0xff] (!%p253_p9) }
  0x15   : > { %s1396_s13 = smov (!%p290_p10, %s819_s13), 31  ;;  %891 = vmatpush3.bf16.msra.mxu0 %v397_v6  ;;  %v591_v53 = vpack.c.bf16 %v577_v51, %v576_v49  ;;  %v592_v56 = vpack.c.bf16 %v579_v55, %v578_v54  ;;  %v580_v57 = vld [vmem:[%s1386_s5 + $0x30] sm:$0xff]  ;;  %v581_v58 = vld [vmem:[%s1386_s5 + $0x38] sm:$0xff]  ;;  %v582_v60 = vld [vmem:[%s1386_s5 + $0x40] sm:$0xff] }
  0x16   : > { %s820_s9 = sshll.u32 %s1396_s13, 3  ;;  %892 = vmatprep.subr.bf16.mxu0 %v398_v11  ;;  %922 = vmatprep.subr.bf16.mxu1 %v590_v50  ;;  %v593_v59 = vpack.c.bf16 %v581_v58, %v580_v57  ;;  %v583_v61 = vld [vmem:[%s1386_s5 + $0x48] sm:$0xff]  ;;  %v585_v12 = vld [vmem:[%s1386_s5 + $0x58] sm:$0xff]  ;;  %s1035_s13 = sshll.u32 %s1097_s19, 4  ;;  %s1036_s13 = int_to_ptr.vmem [resolvable:$false] %s1035_s13 }
  0x17   : > { %s1216_s20 = scalar_lea.vmem %s1382_s1, %s820_s9  ;;  %s1229_s14 = scalar_lea.vmem %s1381_s0, %s820_s9  ;;  %v594_v62 = vpack.c.bf16 %v583_v61, %v582_v60 }
  0x18   : > { %v313_v14 = vld [vmem:[%s1216_s20 + $0x10] sm:$0xff]  ;;  %v311_v15 = vld [vmem:[%s1216_s20] sm:$0xff]  ;;  %v314_v17 = vld [vmem:[%s1216_s20 + $0x18] sm:$0xff]  ;;  %s1037_s21 = scalar_lea.vmem %s1036_s13, 2048 }
  0x19   : > { %328 = vperm.xlu1 %998, %v313_v14   ;;  %322 = vperm.xlu0 %997, %v311_v15   ;;  %v312_v18 = vld [vmem:[%s1216_s20 + $0x8] sm:$0xff]  ;;  %v303_v21 = vld [vmem:[%s1229_s14] sm:$0xff]  ;;  %v305_v25 = vld [vmem:[%s1229_s14 + $0x10] sm:$0xff] }
  0x1a   : > { %v304_v22 = vld [vmem:[%s1229_s14 + $0x8] sm:$0xff]  ;;  %v306_v26 = vld [vmem:[%s1229_s14 + $0x18] sm:$0xff]  ;;  %v315_v29 = vld [vmem:[%s1216_s20 + $0x20] sm:$0xff]  ;;  %893 = vmatpush3.bf16.msra.mxu0 %v398_v11 }
  0x1b   : > { %v373_v24 = vpack.c.bf16 %v304_v22, %v303_v21  ;;  %v374_v27 = vpack.c.bf16 %v306_v26, %v305_v25  ;;  %v316_v28 = vld [vmem:[%s1216_s20 + $0x28] sm:$0xff]  ;;  %894 = vmatprep.subr.bf16.mxu0 %v399_v19  ;;  %v318_v33 = vld [vmem:[%s1216_s20 + $0x38] sm:$0xff]  ;;  %v317_v34 = vld [vmem:[%s1216_s20 + $0x30] sm:$0xff]  ;;  %s288_s20 = scalar_lea.vmem [#allocation2], %s818_s8 }
  0x1c   : > { %v307_v35 = vld [vmem:[%s1229_s14 + $0x20] sm:$0xff]  ;;  %v308_v36 = vld [vmem:[%s1229_s14 + $0x28] sm:$0xff]  ;;  %v309_v39 = vld [vmem:[%s1229_s14 + $0x30] sm:$0xff]  ;;  %s740_s15 = sshll.u32 %s288_s20, 4  ;;  %s1336_s15 = int_to_ptr.vmem [resolvable:$true] %s740_s15 }
  0x1d   : > { %331 = vperm.xlu1 %998, %v314_v17   ;;  %325 = vperm.xlu0 %997, %v312_v18   ;;  %v375_v38 = vpack.c.bf16 %v308_v36, %v307_v35  ;;  %v310_v40 = vld [vmem:[%s1229_s14 + $0x38] sm:$0xff]  ;;  %v584_v11 = vld [vmem:[%s1386_s5 + $0x50] sm:$0xff]  ;;  %v586_v17 = vld [vmem:[%s1386_s5 + $0x60] sm:$0xff]  ;;  %s858_s14 = sshll.u32 %s1161_s28, 10  ;;  %s1340_s28 = scalar_lea.sflag [#allocation3], %s286_s29 }
  0x1e   : > { %914 = vmatprep.mubr.msk.bf16.mxu1 %vm469_vm0, %v373_v24  ;;  %895 = vmatpush3.bf16.msra.mxu0 %v399_v19  ;;  %v376_v43 = vpack.c.bf16 %v310_v40, %v309_v39  ;;  %v595_v14 = vpack.c.bf16 %v585_v12, %v584_v11  ;;  %v587_v18 = vld [vmem:[%s1386_s5 + $0x68] sm:$0xff]  ;;  %v588_v21 = vld [vmem:[%s1386_s5 + $0x70] sm:$0xff]  ;;  %v589_v22 = vld [vmem:[%s1386_s5 + $0x78] sm:$0xff]  ;;  %s1334_s17 = scalar_lea.hbm %s1388_s7, %s858_s14  ;;  %s1031_s18 = scalar_lea.vmem %s1336_s15, 1024 }
  0x1f   : > { %915 = vmatmul.mubr.msk.bf16.vlgmr.msra.gmra.mrb[0].mxu1 %vm469_vm0, %v374_v27  ;;  %896 = vmatprep.subr.bf16.mxu0 %v400_v30  ;;  %v596_v19 = vpack.c.bf16 %v587_v18, %v586_v17  ;;  %v597_v24 = vpack.c.bf16 %v589_v22, %v588_v21  ;;  %p1032_p11 = scmp.ne.s32.totalorder %s1336_s15, %s1031_s18  ;;  %p1038_p0 = scmp.lt.s32.totalorder %s1336_s15, %s1036_s13 }
  0x20   : > { %918 = vmatprep.mubr.msk.bf16.mxu1 %vm469_vm0, %v375_v38  ;;  %923 = vmatpush3.bf16.msra.mxu1 %v590_v50  ;;  %p1039_p1 = scmp.lt.s32.totalorder %s1037_s21, %s1031_s18 }
  0x21   : > { %337 = vperm.xlu1 %998, %v316_v28   ;;  %334 = vperm.xlu0 %997, %v315_v29   ;;  %v843_v28 = vld [vmem:[%s1385_s4] ss:$0 sm:$0xff]  ;;  %p1033_p12 = pnand %p1032_p11, %p1178_p5 }
  0x22   : > { %897 = vmatpush3.bf16.msra.mxu0 %v400_v30  ;;  %924 = vmatprep.subr.bf16.mxu1 %v591_v53  ;;  %p1040_p2 = por %p1039_p1, %p1038_p0 }
  0x23   : > { %898 = vmatprep.subr.bf16.mxu0 %v401_v37  ;;  %p1034_p13 = pneg %p1033_p12 }
  0x24   : > { %925 = vmatpush3.bf16.msra.mxu1 %v591_v53 }
  0x25   : > { %343 = vperm.xlu1 %998, %v318_v33   ;;  %340 = vperm.xlu0 %997, %v317_v34   ;;  %p1041_p3 = pnand %p1040_p2, %p1034_p13 }
  0x26   : > { %899 = vmatpush3.bf16.msra.mxu0 %v401_v37  ;;  %926 = vmatprep.subr.bf16.mxu1 %v592_v56 }
  0x27   : > { %919 = vmatmul.mubr.msk.bf16.gmra.mrb[4].mxu1 %vm469_vm0, %v376_v43  ;;  %900 = vmatprep.subr.bf16.mxu0 %v402_v44 }
  0x28   : > { %927 = vmatpush3.bf16.msra.mxu1 %v592_v56 }
  0x29   : > { %928 = vmatprep.subr.bf16.mxu1 %v593_v59 }
  0x2a   : > { %901 = vmatpush3.bf16.msra.mxu0 %v402_v44 }
  0x2b   : > { %902 = vmatprep.subr.bf16.mxu0 %v403_v52 }
  0x2c   : > { %929 = vmatpush3.bf16.msra.mxu1 %v593_v59 }
  0x2d   : > { %930 = vmatprep.subr.bf16.mxu1 %v594_v62 }
  0x2e   : > { %903 = vmatpush3.bf16.msra.mxu0 %v403_v52 }
  0x30   : > { %931 = vmatpush3.bf16.msra.mxu1 %v594_v62 }
  0x31   : > { %932 = vmatprep.subr.bf16.mxu1 %v595_v14 }
  0x34   : > { %933 = vmatpush3.bf16.msra.mxu1 %v595_v14 }
  0x35   : > { %934 = vmatprep.subr.bf16.mxu1 %v596_v19 }
  0x38   : > { %935 = vmatpush3.bf16.msra.mxu1 %v596_v19 }
  0x39   : > { %936 = vmatprep.subr.bf16.mxu1 %v597_v24 }
  0x3c   : > { %937 = vmatpush3.bf16.msra.mxu1 %v597_v24 }
  0x98   : > { %v329_v0 = vpop.permute.xlu1 %328  ;;  %v323_v1 = vpop.permute.xlu0 %322 }
  0x99   : > { %vm347_vm1 = vcmp.eq.s32.totalorder %v329_v0, %v320_v2  ;;  %vm345_vm4 = vcmp.eq.s32.totalorder %v323_v1, %v320_v2  ;;  %v844_v0 = vld [vmem:[%s1387_s6] ss:$0 sm:$0xff] }
  0x9c   : > { %v332_v3 = vpop.permute.xlu1 %331  ;;  %v326_v4 = vpop.permute.xlu0 %325 }
  0x9d   : > { %vm348_vm2 = vcmp.eq.s32.totalorder %v332_v3, %v320_v2  ;;  %vm346_vm3 = vcmp.eq.s32.totalorder %v326_v4, %v320_v2 }
  0x9e   : > { %vm833_vm5 = vmpackc.low %vm348_vm2, %vm347_vm1 }
  0x9f   : > { %vm831_vm6 = vmpackc.low %vm346_vm3, %vm345_vm4 }
  0xa0   : > { %904 = vmatprep.mubr.msk.bf16.mxu0 %vm831_vm6, %v1096_v5  ;;  %v338_v6 = vpop.permute.xlu1 %337  ;;  %v335_v7 = vpop.permute.xlu0 %334 }
  0xa1   : > { %vm350_vm7 = vcmp.eq.s32.totalorder %v338_v6, %v320_v2  ;;  %905 = vmatmul.mubr.msk.bf16.vlgmr.msra.gmra.mrb[0].mxu0 %vm833_vm5, %v1096_v5  ;;  %vm349_vm8 = vcmp.eq.s32.totalorder %v335_v7, %v320_v2 }
  0xa2   : > { %vm835_vm9 = vmpackc.low %vm350_vm7, %vm349_vm8 }
  0xa3   : > { %908 = vmatprep.mubr.msk.bf16.mxu0 %vm835_vm9, %v1096_v5 }
  0xa4   : > { %v344_v8 = vpop.permute.xlu1 %343  ;;  %v341_v9 = vpop.permute.xlu0 %340 }
  0xa5   : > { %vm352_vm10 = vcmp.eq.s32.totalorder %v344_v8, %v320_v2  ;;  %vm351_vm11 = vcmp.eq.s32.totalorder %v341_v9, %v320_v2 }
  0xa6   : > { %vm837_vm12 = vmpackc.low %vm352_vm10, %vm351_vm11 }
  0xa9   : > { %909 = vmatmul.mubr.msk.bf16.gmra.mrb[4].mxu0 %vm837_vm12, %v1096_v5 }
  0xf2   : > { %v916_v10 = vpop.f32.mrb[0].mxu1 }
  0xf3   : > { %v516_v13 = vpop.f32.mrb[1].mxu1 }
  0xf4   : > { %v917_v15 = vpop.f32.mrb[2].mxu1 }
  0xf5   : > { %v519_v16 = vpop.f32.mrb[3].mxu1 }
  0xfa   : > { %v920_v20 = vpop.f32.mrb[4].mxu1 }
  0xfb   : > { %v532_v23 = vpop.f32.mrb[5].mxu1 }
  0xfc   : > { %v921_v25 = vpop.f32.mrb[6].mxu1 }
  0xfd   : > { %v535_v26 = vpop.f32.mrb[7].mxu1 }
 0x174   : > { %v906_v27 = vpop.f32.mrb[0].mxu0 }
 0x175   : > { %v525_v29 = vadd.f32 %v916_v10, %v906_v27  ;;  %v438_v30 = vpop.f32.mrb[1].mxu0 }
 0x176   : > { %v517_v31 = vadd.f32 %v516_v13, %v438_v30  ;;  %v907_v32 = vpop.f32.mrb[2].mxu0 }
 0x177   : > { %v556_v33 = vadd.f32 %v843_v28, %v525_v29  ;;  %v528_v34 = vadd.f32 %v917_v15, %v907_v32  ;;  %v441_v35 = vpop.f32.mrb[3].mxu0 }
 0x178   : > { %v554_v36 = vadd.f32 %v843_v28, %v517_v31  ;;  %v520_v37 = vadd.f32 %v519_v16, %v441_v35 }
 0x179   : > { %v557_v38 = vadd.f32 %v843_v28, %v528_v34  ;;  %v564_v40 = vmax.f32 %v556_v33, 0.0 }
 0x17a   : > { %v555_v39 = vadd.f32 %v843_v28, %v520_v37  ;;  %v562_v42 = vmax.f32 %v554_v36, 0.0 }
 0x17b   : > { %v565_v41 = vmax.f32 %v557_v38, 0.0 }
 0x17c   : > { %v563_v43 = vmax.f32 %v555_v39, 0.0  ;;  %v910_v44 = vpop.f32.mrb[4].mxu0 }
 0x17d   : > { %v571_v45 = vpack.c.bf16 %v565_v41, %v564_v40  ;;  %v541_v46 = vadd.f32 %v920_v20, %v910_v44  ;;  %v454_v47 = vpop.f32.mrb[5].mxu0 }
 0x17e   : > { %v533_v48 = vadd.f32 %v532_v23, %v454_v47  ;;  %v911_v49 = vpop.f32.mrb[6].mxu0  ;;  %v570_v50 = vpack.c.bf16 %v563_v43, %v562_v42 }
 0x17f   : > { %v560_v51 = vadd.f32 %v843_v28, %v541_v46  ;;  %v544_v52 = vadd.f32 %v921_v25, %v911_v49  ;;  %v457_v53 = vpop.f32.mrb[7].mxu0 }
 0x180   : > { %v558_v54 = vadd.f32 %v843_v28, %v533_v48  ;;  %v536_v55 = vadd.f32 %v535_v26, %v457_v53  ;;  %938 = vmatprep.mubr.bf16.mxu1 %v570_v50 }
 0x181   : > { %v561_v56 = vadd.f32 %v843_v28, %v544_v52  ;;  %939 = vmatmul.mubr.bf16.vlgmr.msra.gmra.mrb[8].mxu1 %v571_v45  ;;  %v568_v58 = vmax.f32 %v560_v51, 0.0 }
 0x182   : > { %v559_v57 = vadd.f32 %v843_v28, %v536_v55  ;;  %v566_v60 = vmax.f32 %v558_v54, 0.0 }
 0x183   : > { %v569_v59 = vmax.f32 %v561_v56, 0.0 }
 0x184   : > { %v567_v61 = vmax.f32 %v559_v57, 0.0 }
 0x185   : > { %v573_v62 = vpack.c.bf16 %v569_v59, %v568_v58 }
 0x186   : > { %v572_v63 = vpack.c.bf16 %v567_v61, %v566_v60 }
 0x188   : > { %942 = vmatprep.mubr.bf16.mxu1 %v572_v63 }
 0x189   : > { %943 = vmatmul.mubr.bf16.gmra.mrb[12].mxu1 %v573_v62 }
 0x254   : > { %v940_v1 = vpop.f32.mrb[8].mxu1 }
 0x255   : > { %v648_v2 = vadd.f32 %v940_v1, %v844_v0  ;;  %v639_v3 = vpop.f32.mrb[9].mxu1 }
 0x256   : > { %v640_v4 = vadd.f32 %v844_v0, %v639_v3  ;;  %v941_v5 = vpop.f32.mrb[10].mxu1 }
 0x257   : > { %v847_v6 = vmul.f32 -1.442695, %v648_v2  ;;  %v651_v7 = vadd.f32 %v941_v5, %v844_v0  ;;  %v642_v8 = vpop.f32.mrb[11].mxu1 }
 0x258   : > { %v845_v9 = vmul.f32 -1.442695, %v640_v4  ;;  %v643_v10 = vadd.f32 %v844_v0, %v642_v8 }
 0x259   : > { %999 = vpow2.f32 %v847_v6  ;;  %v848_v11 = vmul.f32 -1.442695, %v651_v7 }
 0x25a   : > { %1001 = vpow2.f32 %v845_v9  ;;  %v846_v12 = vmul.f32 -1.442695, %v643_v10 }
 0x25b   : > { %1003 = vpow2.f32 %v848_v11 }
 0x25c   : > { %1005 = vpow2.f32 %v846_v12  ;;  %v944_v13 = vpop.f32.mrb[12].mxu1 }
 0x25d   : > { %v664_v14 = vadd.f32 %v944_v13, %v844_v0  ;;  %v655_v15 = vpop.f32.mrb[13].mxu1 }
 0x25e   : > { %v656_v16 = vadd.f32 %v844_v0, %v655_v15  ;;  %v945_v17 = vpop.f32.mrb[14].mxu1 }
 0x25f   : > { %v851_v18 = vmul.f32 -1.442695, %v664_v14  ;;  %v667_v19 = vadd.f32 %v945_v17, %v844_v0  ;;  %v658_v20 = vpop.f32.mrb[15].mxu1 }
 0x260   : > { %v849_v21 = vmul.f32 -1.442695, %v656_v16  ;;  %v659_v22 = vadd.f32 %v844_v0, %v658_v20 }
 0x261   : > { %1007 = vpow2.f32 %v851_v18  ;;  %v852_v23 = vmul.f32 -1.442695, %v667_v19 }
 0x262   : > { %1009 = vpow2.f32 %v849_v21  ;;  %v850_v24 = vmul.f32 -1.442695, %v659_v22 }
 0x263   : > { %v1000_v25 = vpop.eup %999  ;;  %1011 = vpow2.f32 %v852_v23 }
 0x264   : > { %v1002_v26 = vpop.eup %1001  ;;  %v696_v27 = vadd.f32 1.0, %v1000_v25  ;;  %1013 = vpow2.f32 %v850_v24 }
 0x265   : > { %v1004_v28 = vpop.eup %1003  ;;  %v694_v29 = vadd.f32 1.0, %v1002_v26 }
 0x266   : > { %v1006_v30 = vpop.eup %1005  ;;  %1015 = vrcp.f32 %v696_v27  ;;  %v697_v31 = vadd.f32 1.0, %v1004_v28 }
 0x267   : > { %1017 = vrcp.f32 %v694_v29  ;;  %v695_v32 = vadd.f32 1.0, %v1006_v30 }
 0x268   : > { %1019 = vrcp.f32 %v697_v31 }
 0x269   : > { %1021 = vrcp.f32 %v695_v32 }
 0x26b   : > { %v1008_v33 = vpop.eup %1007 }
 0x26c   : > { %v1010_v34 = vpop.eup %1009  ;;  %v700_v35 = vadd.f32 1.0, %v1008_v33 }
 0x26d   : > { %v1012_v36 = vpop.eup %1011  ;;  %v698_v37 = vadd.f32 1.0, %v1010_v34 }
 0x26e   : > { %v1014_v38 = vpop.eup %1013  ;;  %1023 = vrcp.f32 %v700_v35  ;;  %v701_v39 = vadd.f32 1.0, %v1012_v36 }
 0x26f   : > { %1025 = vrcp.f32 %v698_v37  ;;  %v699_v40 = vadd.f32 1.0, %v1014_v38 }
 0x270   : > { %v1016_v41 = vpop.eup %1015  ;;  %1027 = vrcp.f32 %v701_v39 }
 0x271   : > { %v1018_v42 = vpop.eup %1017  ;;  %720 = vst [vmem:[%s288_s20 + $0x10] sm:$0xff] %v1016_v41  ;;  %1029 = vrcp.f32 %v699_v40 }
 0x272   : > { %v1020_v43 = vpop.eup %1019  ;;  %718 = vst [vmem:[%s288_s20] sm:$0xff] %v1018_v42 }
 0x273   : > { %v1022_v44 = vpop.eup %1021  ;;  %721 = vst [vmem:[%s288_s20 + $0x18] sm:$0xff] %v1020_v43 }
 0x274   : > { %719 = vst [vmem:[%s288_s20 + $0x8] sm:$0xff] %v1022_v44 }
 0x278   : > { %v1024_v45 = vpop.eup %1023 }
 0x279   : > { %v1026_v46 = vpop.eup %1025  ;;  %724 = vst [vmem:[%s288_s20 + $0x30] sm:$0xff] %v1024_v45 }
 0x27a   : > { %v1028_v47 = vpop.eup %1027  ;;  %722 = vst [vmem:[%s288_s20 + $0x20] sm:$0xff] %v1026_v46 }
 0x27b   : > { %v1030_v48 = vpop.eup %1029  ;;  %725 = vst [vmem:[%s288_s20 + $0x38] sm:$0xff] %v1028_v47 }
 0x27c   : > { %723 = vst [vmem:[%s288_s20 + $0x28] sm:$0xff] %v1030_v48 }
 0x27d   : > { %1044 = shalt.err (!%p1041_p3)
}
 0x27e   : > { %s1045_s22 = scalar_lea.hbm %s1334_s17, 1024  ;;  %s1049_s8 = scalar_lea.hbm %s1388_s7, 4096 }
 0x27f   : > { %p1046_p4 = scmp.ne.s32.totalorder %s1334_s17, %s1045_s22  ;;  %p1050_p9 = scmp.lt.u32.totalorder %s1334_s17, %s1388_s7 }
 0x280   : > { %p1051_p10 = scmp.lt.u32.totalorder %s1049_s8, %s1045_s22  ;;  %p1053_p12 = scmp.lt.u32.totalorder %s1045_s22, %s1334_s17 }
 0x281   : > { %p1047_p7 = pnand %p1046_p4, %p1178_p5 }
 0x282   : > { %p1052_p11 = por %p1051_p10, %p1050_p9 }
 0x283   : > { %p1048_p8 = pneg %p1047_p7 }
 0x284   : > { %p1054_p13 = por %p1053_p12, %p1052_p11 }
 0x286   : > { %p1055_p0 = pnand %p1054_p13, %p1048_p8 }
 0x288   : > { %1058 = shalt.err (!%p1055_p0)
}
 0x289   : > { %s1098_s16 = smov 128   ;;  %s1099_s9 = smov 8  }
 0x28a   : > { %954 = dma.vmem_to_hbm [thread:$0]  (%p1178_p5), %s1336_s15, 1024, %s1334_s17, %s1340_s28, %s1098_s16, %s1098_s16, %s1099_s9  }
 0x28b PF: > { %p960_p1 = scmp.ge.s32.totalorder %s1093_s27, 2  ;;  %s755_s18 = sand.u32 1, %s1081_s24  }
 0x28c   : > { %s756_s19 = scalar_lea.sflag [#allocation3], %s755_s18 }
 0x28d   : > { %p957_p2 = pnand %p960_p1, %p1182_p6 }
 0x28f   : > { %1076 = dma.done.wait (!%p957_p2), %s756_s19, 1024  }
 0x290   : > { %1078 = vsyncadd (!%p957_p2), %s756_s19, 4294966272  ;;  %p17_p3 = scmp.ge.s32.totalorder %s1165_s30, 6   ;;  %s1391_s24 = smov %s1085_s25 }
 0x291   : > { %s1392_s25 = smov %s1089_s26  ;;  %s1393_s26 = smov %s1176_s10 }
 0x292   : > { %s1394_s27 = smov %s1165_s30  ;;  %19 = sbr.rel (!%p17_p3) target bundleno = 3 (0x3), region = 86 }
 0x299   :  { %761 = vsyncpa [#allocation3], 1 }
 0x29a   :  { %763 = vsyncpa [#allocation3 + $0x1], 1 }

</bundles_post_ra>
